<compile_context>
chip_gen: v7x
topology: tpu7x:2x2x1
jax: 0.10.0
libtpu: 0.0.40
codegen_flags: <defaults>
</compile_context>

<pallas_src>
import functools

import jax
import jax.numpy as jnp
from jax.experimental import pallas as pl
from jax.experimental.pallas import tpu as pltpu

EPS = 1e-5


# ----------------------------- Pallas kernels ----------------------------- #

def _conv_stage_kernel(x_ref, w_ref, b_ref, scale_ref, shift_ref,
                       y_ref, stats_ref, *, H, WCin, apply_pre_act):
    """One fused stage: [BN+ReLU of previous stage] -> 3x3 conv -> +bias -> stats.

    x_ref:     (H, W*Cin)        one image, lane-dense NHWC (f32 or bf16)
    w_ref:     (3*W*Cin, W*Cout) banded weights, one (W*Cin, W*Cout) block per kh
    b_ref:     (1, W*Cout)       bias tiled along W
    scale_ref: (1, W*Cin)        previous-stage BN scale (tiled along W)
    shift_ref: (1, W*Cin)        previous-stage BN shift (tiled along W)
    y_ref:     (H, W*Cout)       pre-BN conv output (lane-dense)
    stats_ref: (2, W*Cout)       per-column [sum, centered sum-of-squares]
    """
    # Previous-stage BN-apply + ReLU, fused as a lane-dense pre-activation.
    x = x_ref[...].astype(jnp.float32)
    if apply_pre_act:
        x = jnp.maximum(x * scale_ref[...] + shift_ref[...], 0.0)

    # Width direction + channels as three banded matmuls (lane-dense result,
    # width zero-padding is baked into the banded weight as zero blocks).
    t0 = jnp.dot(x, w_ref[0 * WCin:1 * WCin, :], preferred_element_type=jnp.float32)
    t1 = jnp.dot(x, w_ref[1 * WCin:2 * WCin, :], preferred_element_type=jnp.float32)
    t2 = jnp.dot(x, w_ref[2 * WCin:3 * WCin, :], preferred_element_type=jnp.float32)

    # Vertical taps: out[h] = t0[h-1] + t1[h] + t2[h+1] with zero rows at the
    # image boundary.  Implemented as two tiny (H, H) shift matmuls so the
    # boundary zero-padding falls out of the all-zero first/last matrix row.
    # (Built in-kernel: ~2 vregs of VPU work, cheaper than an extra input DMA.)
    r = jax.lax.broadcasted_iota(jnp.int32, (H, H), 0)
    c = jax.lax.broadcasted_iota(jnp.int32, (H, H), 1)
    s_dn = (r == c + 1).astype(jnp.float32)   # picks row h-1 (row 0 -> zeros)
    s_up = (r == c - 1).astype(jnp.float32)   # picks row h+1 (row H-1 -> zeros)

    y = (t1
         + jnp.dot(s_dn, t0, preferred_element_type=jnp.float32)
         + jnp.dot(s_up, t2, preferred_element_type=jnp.float32)
         + b_ref[...])                                         # (H, W*Cout)

    # Lane-dense BatchNorm partials: per-(w, c) column sum and CENTERED sum of
    # squares (exact Chan combine in the wrapper avoids E[y^2]-E[y]^2 cancel).
    colsum = jnp.sum(y, axis=0, keepdims=True)                  # (1, W*Cout)
    d = y - colsum * (1.0 / H)
    stats_ref[0:1, :] = colsum
    stats_ref[1:2, :] = jnp.sum(d * d, axis=0, keepdims=True)

    # Lane-dense store of the pre-BN conv output (bf16 on the default path).
    y_ref[...] = y.astype(y_ref.dtype)


def _bn_relu_kernel(y_ref, scale_ref, shift_ref, o_ref):
    """Final BN-apply + ReLU on a lane-dense (H, W*C) tile (full-lane vld/vst)."""
    a = y_ref[...].astype(jnp.float32) * scale_ref[...] + shift_ref[...]
    o_ref[...] = jnp.maximum(a, 0.0).astype(o_ref.dtype)


# ------------------------------ JAX wrappers ------------------------------ #

def _banded_weight(w_hwio, W):
    """(3, 3, Cin, Cout) HWIO weights -> (3*W*Cin, W*Cout) banded matrix.

    band[kh*W*Cin + w_in*Cin + ci, w_out*Cout + co] =
        w[kh, w_in - w_out + 1, ci, co]  if 0 <= w_in - w_out + 1 <= 2 else 0
    """
    KH, KW, Cin, Cout = w_hwio.shape
    w_in = jnp.arange(W)[:, None]
    w_out = jnp.arange(W)[None, :]
    kw = w_in - w_out + 1                                        # (W, W)
    valid = ((kw >= 0) & (kw < KW)).astype(jnp.float32)
    wk = w_hwio.astype(jnp.float32)[:, jnp.clip(kw, 0, KW - 1)]  # (3, W, W, Cin, Cout)
    wk = wk * valid[None, :, :, None, None]
    band = jnp.transpose(wk, (0, 1, 3, 2, 4))                    # (kh, w_in, ci, w_out, co)
    return band.reshape(KH * W * Cin, W * Cout)


def _conv_stage(x, w_hwio, bias, scale, shift, *, out_dtype):
    """x: (N, H, W*Cin) lane-dense NHWC. Returns:
       y:     (N, H, W*Cout) pre-BN conv output (out_dtype)
       stats: (N, 2, W*Cout) per-column [sum, centered sumsq] partials (f32)."""
    N, H, WCin = x.shape
    Cin, Cout = w_hwio.shape[2], w_hwio.shape[3]
    W = WCin // Cin
    WCout = W * Cout

    apply_pre_act = scale is not None
    if apply_pre_act:
        scale_t = jnp.tile(scale.astype(jnp.float32), W).reshape(1, WCin)
        shift_t = jnp.tile(shift.astype(jnp.float32), W).reshape(1, WCin)
    else:  # stage 1: no preceding BN/ReLU (refs are simply unused in-kernel)
        scale_t = jnp.ones((1, WCin), jnp.float32)
        shift_t = jnp.zeros((1, WCin), jnp.float32)

    w_band = _banded_weight(w_hwio, W)                            # (3*W*Cin, W*Cout)
    b_row = jnp.tile(bias.astype(jnp.float32), W).reshape(1, WCout)

    kernel = functools.partial(_conv_stage_kernel, H=H, WCin=WCin,
                               apply_pre_act=apply_pre_act)
    cost = pl.CostEstimate(
        flops=2 * N * H * W * 9 * Cin * Cout + 4 * N * H * H * WCout,
        transcendentals=0,
        bytes_accessed=int(x.size * x.dtype.itemsize
                           + N * H * WCout * jnp.dtype(out_dtype).itemsize
                           + 4 * (w_band.size + b_row.size + 2 * WCin
                                  + N * 2 * WCout)))

    y, stats = pl.pallas_call(
        kernel,
        grid=(N,),                                               # whole image / step
        in_specs=[
            pl.BlockSpec((None, H, WCin), lambda n: (n, 0, 0)),
            pl.BlockSpec((3 * WCin, WCout), lambda n: (0, 0)),
            pl.BlockSpec((1, WCout), lambda n: (0, 0)),
            pl.BlockSpec((1, WCin), lambda n: (0, 0)),
            pl.BlockSpec((1, WCin), lambda n: (0, 0)),
        ],
        out_specs=[
            pl.BlockSpec((None, H, WCout), lambda n: (n, 0, 0)),
            pl.BlockSpec((None, 2, WCout), lambda n: (n, 0, 0)),
        ],
        out_shape=[
            jax.ShapeDtypeStruct((N, H, WCout), out_dtype),
            jax.ShapeDtypeStruct((N, 2, WCout), jnp.float32),
        ],
        compiler_params=pltpu.CompilerParams(
            dimension_semantics=("parallel",),   # N=2 splits across v7x's 2 TCs
            vmem_limit_bytes=32 * 1024 * 1024),  # usage ~1 MiB/step; ample on v7x 64 MiB
        cost_estimate=cost,
    )(x, w_band, b_row, scale_t, shift_t)
    return y, stats


def _finalize_bn(stats, gamma, beta, *, H, W, C, eps=EPS):
    """Per-column centered partials -> per-channel BN scale/shift (training mode).

    Exact Chan combine of (count=H) groups indexed by (batch, w):
      mean = sum(group sums) / count
      M2   = sum(group M2) + sum(H * (group_mean - mean)^2)
    """
    N = stats.shape[0]
    sums = stats[:, 0, :].reshape(N, W, C)
    m2s = stats[:, 1, :].reshape(N, W, C)
    count = N * W * H
    mean = jnp.sum(sums, axis=(0, 1)) / count                    # (C,)
    group_mean = sums / H                                        # (N, W, C)
    m2 = jnp.sum(m2s, axis=(0, 1)) + H * jnp.sum((group_mean - mean) ** 2,
                                                 axis=(0, 1))
    var = m2 / count                                             # biased variance
    inv = jax.lax.rsqrt(var + eps)
    scale = gamma.astype(jnp.float32) * inv
    shift = beta.astype(jnp.float32) - mean * scale
    return scale, shift


def _bn_relu(y, scale, shift):
    """Final BN-apply + ReLU, lane-dense (N, H, W*C) in -> (N, H, W*C) out."""
    N, H, WC = y.shape
    W = WC // scale.shape[0]
    scale_t = jnp.tile(scale.astype(jnp.float32), W).reshape(1, WC)
    shift_t = jnp.tile(shift.astype(jnp.float32), W).reshape(1, WC)
    return pl.pallas_call(
        _bn_relu_kernel,
        grid=(N,),
        in_specs=[pl.BlockSpec((None, H, WC), lambda n: (n, 0, 0)),
                  pl.BlockSpec((1, WC), lambda n: (0, 0)),
                  pl.BlockSpec((1, WC), lambda n: (0, 0))],
        out_specs=pl.BlockSpec((None, H, WC), lambda n: (n, 0, 0)),
        out_shape=jax.ShapeDtypeStruct((N, H, WC), jnp.float32),
        compiler_params=pltpu.CompilerParams(
            dimension_semantics=("parallel",),
            vmem_limit_bytes=32 * 1024 * 1024),
    )(y, scale_t, shift_t)


def conv_block_forward(x_nchw, params, *, interstage_dtype=jnp.bfloat16):
    """ConvBlock forward. Input/output NCHW like the PyTorch module.

    interstage_dtype: storage dtype of the y1/y2 activations between
    pallas_calls (bf16 halves HBM traffic; all in-kernel math is f32).
    Note: the whole (H, W*C) image is processed per grid step; larger images
    would need an H-tiled grid with carried boundary rows ("arbitrary" axis).
    """
    N, Cin, H, W = x_nchw.shape
    Cout = params["w1"].shape[-1]

    # NCHW -> lane-dense NHWC flattened to (N, H, W*Cin): only layout pass on
    # the input (smallest tensor).
    x = jnp.transpose(x_nchw, (0, 2, 3, 1)).reshape(N, H, W * Cin)

    # Stage 1: conv1 + bias (+ lane-dense BN1 partial stats).
    y1, st1 = _conv_stage(x, params["w1"], params["b1"], None, None,
                          out_dtype=interstage_dtype)
    scale1, shift1 = _finalize_bn(st1, params["g1"], params["be1"], H=H, W=W, C=Cout)

    # Stage 2: fused BN1-apply + ReLU + conv2 + bias (+ BN2 partial stats).
    y2, st2 = _conv_stage(y1, params["w2"], params["b2"], scale1, shift1,
                          out_dtype=interstage_dtype)
    scale2, shift2 = _finalize_bn(st2, params["g2"], params["be2"], H=H, W=W, C=Cout)

    # Stage 3: BN2-apply + ReLU (lane-dense in/out), then one tiny XLA
    # NHWC->NCHW transpose in the wrapper (avoids the in-kernel lane-shrinking
    # reshape flagged by the review).
    out = _bn_relu(y2, scale2, shift2)                           # (N, H, W*Cout)
    return jnp.transpose(out.reshape(N, H, W, Cout), (0, 3, 1, 2))


# ------------------------ pure-JAX reference (check) ----------------------- #

def _ref_conv_block(x_nchw, params):
    x = jnp.transpose(x_nchw, (0, 2, 3, 1))

    def conv(v, w, b):
        y = jax.lax.conv_general_dilated(
            v, w, window_strides=(1, 1), padding="SAME",
            dimension_numbers=("NHWC", "HWIO", "NHWC"))
        return y + b.reshape(1, 1, 1, -1)

    def bn_relu(y, g, be):
        mean = jnp.mean(y, axis=(0, 1, 2), keepdims=True)
        var = jnp.mean(jnp.square(y - mean), axis=(0, 1, 2), keepdims=True)
        out = (y - mean) * jax.lax.rsqrt(var + EPS) * g.reshape(1, 1, 1, -1) \
              + be.reshape(1, 1, 1, -1)
        return jnp.maximum(out, 0.0)

    a1 = bn_relu(conv(x, params["w1"], params["b1"]), params["g1"], params["be1"])
    a2 = bn_relu(conv(a1, params["w2"], params["b2"]), params["g2"], params["be2"])
    return jnp.transpose(a2, (0, 3, 1, 2))


# ---------------------------------- main ----------------------------------- #

if __name__ == "__main__":
    key = jax.random.PRNGKey(0)
    N, Cin, Cout, H, W = 2, 4, 8, 16, 16

    k = jax.random.split(key, 9)
    # Deterministic synthetic parameters (shapes match nn.Conv2d / nn.BatchNorm2d).
    params = {
        "w1": 0.1 * jax.random.normal(k[0], (3, 3, Cin, Cout), jnp.float32),   # HWIO
        "b1": 0.1 * jax.random.normal(k[1], (Cout,), jnp.float32),
        "g1": 1.0 + 0.1 * jax.random.normal(k[2], (Cout,), jnp.float32),
        "be1": 0.1 * jax.random.normal(k[3], (Cout,), jnp.float32),
        "w2": 0.1 * jax.random.normal(k[4], (3, 3, Cout, Cout), jnp.float32),
        "b2": 0.1 * jax.random.normal(k[5], (Cout,), jnp.float32),
        "g2": 1.0 + 0.1 * jax.random.normal(k[6], (Cout,), jnp.float32),
        "be2": 0.1 * jax.random.normal(k[7], (Cout,), jnp.float32),
    }

    x = jax.random.normal(k[8], (N, Cin, H, W), jnp.float32)     # NCHW like PyTorch

    ref = jax.block_until_ready(_ref_conv_block(x, params))

    # Exact-math path (f32 inter-stage storage): tight tolerance.
    fwd_f32 = jax.jit(functools.partial(conv_block_forward,
                                        interstage_dtype=jnp.float32))
    out_f32 = jax.block_until_ready(fwd_f32(x, params))
    assert out_f32.shape == (N, Cout, H, W)
    assert jnp.allclose(out_f32, ref, rtol=5e-4, atol=5e-4), "f32 mismatch vs reference"

    # Default perf path (bf16 inter-stage storage): tolerance reflects bf16
    # rounding of the stored activations only (kernel math is still f32).
    fwd_bf16 = jax.jit(functools.partial(conv_block_forward,
                                         interstage_dtype=jnp.bfloat16))
    out_bf16 = jax.block_until_ready(fwd_bf16(x, params))
    assert out_bf16.shape == (N, Cout, H, W)
    assert jnp.allclose(out_bf16, ref, rtol=3e-2, atol=3e-2), "bf16 mismatch vs reference"

    print("KERNEL_OK")
</pallas_src>

<mosaic_0001>
module attributes {stable_mosaic.version = 11 : i64} {
  func.func @_conv_stage_kernel(%arg0: i32, %arg1: memref<1x16x64xf32, #tpu.memory_space<vmem>>, %arg2: memref<192x128xf32, #tpu.memory_space<vmem>>, %arg3: memref<1x128xf32, #tpu.memory_space<vmem>>, %arg4: memref<1x64xf32, #tpu.memory_space<vmem>>, %arg5: memref<1x64xf32, #tpu.memory_space<vmem>>, %arg6: memref<1x16x128xf32, #tpu.memory_space<vmem>>, %arg7: memref<1x2x128xf32, #tpu.memory_space<vmem>>) attributes {dimension_semantics = [#tpu.dimension_semantics<parallel>], iteration_bounds = array<i64: 2>, scalar_prefetch = 0 : i64, scratch_operands = 0 : i64, tpu.core_type = #tpu.core_type<tc>, window_params = [{transform_indices = @transform_0, window_bounds = array<i64: 1, 16, 64>}, {pipeline_mode = #tpu.pipeline_mode<synchronous>, transform_indices = @transform_1, window_bounds = array<i64: 192, 128>}, {pipeline_mode = #tpu.pipeline_mode<synchronous>, transform_indices = @transform_2, window_bounds = array<i64: 1, 128>}, {pipeline_mode = #tpu.pipeline_mode<synchronous>, transform_indices = @transform_3, window_bounds = array<i64: 1, 64>}, {pipeline_mode = #tpu.pipeline_mode<synchronous>, transform_indices = @transform_4, window_bounds = array<i64: 1, 64>}, {transform_indices = @transform_5, window_bounds = array<i64: 1, 16, 128>}, {transform_indices = @transform_6, window_bounds = array<i64: 1, 2, 128>}]} {
    %c0 = arith.constant 0 : index
    %c0_0 = arith.constant 0 : index
    %c0_1 = arith.constant 0 : index
    %0 = vector.load %arg1[%c0, %c0_0, %c0_1] : memref<1x16x64xf32, #tpu.memory_space<vmem>>, vector<1x16x64xf32>
    %1 = vector.shape_cast %0 : vector<1x16x64xf32> to vector<16x64xf32>
    %c0_2 = arith.constant 0 : index
    %c0_3 = arith.constant 0 : index
    %2 = vector.load %arg2[%c0_2, %c0_3] : memref<192x128xf32, #tpu.memory_space<vmem>>, vector<64x128xf32>
    %cst = arith.constant dense<0.000000e+00> : vector<16x128xf32>
    %3 = tpu.matmul %1, %2, %cst {dimension_numbers = #tpu.dot_dimension_numbers<[1], [0], [0], [1], [0, 0, 1, 1], [], []>} : vector<16x64xf32>, vector<64x128xf32>, vector<16x128xf32> -> vector<16x128xf32>
    %c64 = arith.constant 64 : index
    %c0_4 = arith.constant 0 : index
    %4 = vector.load %arg2[%c64, %c0_4] : memref<192x128xf32, #tpu.memory_space<vmem>>, vector<64x128xf32>
    %cst_5 = arith.constant dense<0.000000e+00> : vector<16x128xf32>
    %5 = tpu.matmul %1, %4, %cst_5 {dimension_numbers = #tpu.dot_dimension_numbers<[1], [0], [0], [1], [0, 0, 1, 1], [], []>} : vector<16x64xf32>, vector<64x128xf32>, vector<16x128xf32> -> vector<16x128xf32>
    %c128 = arith.constant 128 : index
    %c0_6 = arith.constant 0 : index
    %6 = vector.load %arg2[%c128, %c0_6] : memref<192x128xf32, #tpu.memory_space<vmem>>, vector<64x128xf32>
    %cst_7 = arith.constant dense<0.000000e+00> : vector<16x128xf32>
    %7 = tpu.matmul %1, %6, %cst_7 {dimension_numbers = #tpu.dot_dimension_numbers<[1], [0], [0], [1], [0, 0, 1, 1], [], []>} : vector<16x64xf32>, vector<64x128xf32>, vector<16x128xf32> -> vector<16x128xf32>
    %8 = tpu.iota {dimensions = array<i32: 0>} : vector<16x16xi32>
    %9 = tpu.iota {dimensions = array<i32: 1>} : vector<16x16xi32>
    %c1_i32 = arith.constant 1 : i32
    %10 = vector.broadcast %c1_i32 : i32 to vector<16x16xi32>
    %11 = arith.addi %9, %10 : vector<16x16xi32>
    %12 = arith.cmpi eq, %8, %11 : vector<16x16xi32>
    %13 = arith.extui %12 : vector<16x16xi1> to vector<16x16xi32>
    %14 = arith.sitofp %13 : vector<16x16xi32> to vector<16x16xf32>
    %c1_i32_8 = arith.constant 1 : i32
    %15 = vector.broadcast %c1_i32_8 : i32 to vector<16x16xi32>
    %16 = arith.subi %9, %15 : vector<16x16xi32>
    %17 = arith.cmpi eq, %8, %16 : vector<16x16xi32>
    %18 = arith.extui %17 : vector<16x16xi1> to vector<16x16xi32>
    %19 = arith.sitofp %18 : vector<16x16xi32> to vector<16x16xf32>
    %cst_9 = arith.constant dense<0.000000e+00> : vector<16x128xf32>
    %20 = tpu.matmul %14, %3, %cst_9 {dimension_numbers = #tpu.dot_dimension_numbers<[1], [0], [0], [1], [0, 0, 1, 1], [], []>} : vector<16x16xf32>, vector<16x128xf32>, vector<16x128xf32> -> vector<16x128xf32>
    %21 = arith.addf %5, %20 : vector<16x128xf32>
    %cst_10 = arith.constant dense<0.000000e+00> : vector<16x128xf32>
    %22 = tpu.matmul %19, %7, %cst_10 {dimension_numbers = #tpu.dot_dimension_numbers<[1], [0], [0], [1], [0, 0, 1, 1], [], []>} : vector<16x16xf32>, vector<16x128xf32>, vector<16x128xf32> -> vector<16x128xf32>
    %23 = arith.addf %21, %22 : vector<16x128xf32>
    %c0_11 = arith.constant 0 : index
    %c0_12 = arith.constant 0 : index
    %24 = vector.load %arg3[%c0_11, %c0_12] : memref<1x128xf32, #tpu.memory_space<vmem>>, vector<1x128xf32>
    %25 = vector.broadcast %24 : vector<1x128xf32> to vector<16x128xf32>
    %26 = arith.addf %23, %25 : vector<16x128xf32>
    %cst_13 = arith.constant dense<0.000000e+00> : vector<128xf32>
    %27 = vector.multi_reduction <add>, %26, %cst_13 [0] : vector<16x128xf32> to vector<128xf32>
    %28 = vector.shape_cast %27 : vector<128xf32> to vector<1x128xf32>
    %cst_14 = arith.constant 6.250000e-02 : f32
    %29 = vector.broadcast %cst_14 : f32 to vector<1x128xf32>
    %30 = arith.mulf %28, %29 : vector<1x128xf32>
    %31 = vector.broadcast %30 : vector<1x128xf32> to vector<16x128xf32>
    %32 = arith.subf %26, %31 : vector<16x128xf32>
    %c0_15 = arith.constant 0 : index
    %c0_16 = arith.constant 0 : index
    %c0_17 = arith.constant 0 : index
    %33 = vector.load %arg7[%c0_15, %c0_16, %c0_17] : memref<1x2x128xf32, #tpu.memory_space<vmem>>, vector<1x1x128xf32>
    %34 = vector.shape_cast %33 : vector<1x1x128xf32> to vector<1x128xf32>
    %35 = vector.shape_cast %28 : vector<1x128xf32> to vector<1x1x128xf32>
    tpu.vector_store %arg7[%c0_15, %c0_16, %c0_17], %35 {strides = array<i32>} : memref<1x2x128xf32, #tpu.memory_space<vmem>>, vector<1x1x128xf32>,
    %36 = arith.mulf %32, %32 : vector<16x128xf32>
    %cst_18 = arith.constant dense<0.000000e+00> : vector<128xf32>
    %37 = vector.multi_reduction <add>, %36, %cst_18 [0] : vector<16x128xf32> to vector<128xf32>
    %38 = vector.shape_cast %37 : vector<128xf32> to vector<1x128xf32>
    %c0_19 = arith.constant 0 : index
    %c1 = arith.constant 1 : index
    %c0_20 = arith.constant 0 : index
    %39 = vector.load %arg7[%c0_19, %c1, %c0_20] : memref<1x2x128xf32, #tpu.memory_space<vmem>>, vector<1x1x128xf32>
    %40 = vector.shape_cast %39 : vector<1x1x128xf32> to vector<1x128xf32>
    %41 = vector.shape_cast %38 : vector<1x128xf32> to vector<1x1x128xf32>
    tpu.vector_store %arg7[%c0_19, %c1, %c0_20], %41 {strides = array<i32>} : memref<1x2x128xf32, #tpu.memory_space<vmem>>, vector<1x1x128xf32>,
    %c0_21 = arith.constant 0 : index
    %c0_22 = arith.constant 0 : index
    %c0_23 = arith.constant 0 : index
    %42 = vector.load %arg6[%c0_21, %c0_22, %c0_23] : memref<1x16x128xf32, #tpu.memory_space<vmem>>, vector<1x16x128xf32>
    %43 = vector.shape_cast %42 : vector<1x16x128xf32> to vector<16x128xf32>
    %44 = vector.shape_cast %26 : vector<16x128xf32> to vector<1x16x128xf32>
    tpu.vector_store %arg6[%c0_21, %c0_22, %c0_23], %44 {strides = array<i32>} : memref<1x16x128xf32, #tpu.memory_space<vmem>>, vector<1x16x128xf32>,
    return
  }
  func.func @transform_0(%arg0: i32) -> (i32, i32, i32) {
    %c0_i32 = arith.constant 0 : i32
    %c0_i32_0 = arith.constant 0 : i32
    %c0_i32_1 = arith.constant 0 : i32
    return %arg0, %c0_i32, %c0_i32_0 : i32, i32, i32
  }
  func.func @transform_1(%arg0: i32) -> (i32, i32) {
    %c0_i32 = arith.constant 0 : i32
    %c0_i32_0 = arith.constant 0 : i32
    %c0_i32_1 = arith.constant 0 : i32
    return %c0_i32, %c0_i32_0 : i32, i32
  }
  func.func @transform_2(%arg0: i32) -> (i32, i32) {
    %c0_i32 = arith.constant 0 : i32
    %c0_i32_0 = arith.constant 0 : i32
    %c0_i32_1 = arith.constant 0 : i32
    return %c0_i32, %c0_i32_0 : i32, i32
  }
  func.func @transform_3(%arg0: i32) -> (i32, i32) {
    %c0_i32 = arith.constant 0 : i32
    %c0_i32_0 = arith.constant 0 : i32
    %c0_i32_1 = arith.constant 0 : i32
    return %c0_i32, %c0_i32_0 : i32, i32
  }
  func.func @transform_4(%arg0: i32) -> (i32, i32) {
    %c0_i32 = arith.constant 0 : i32
    %c0_i32_0 = arith.constant 0 : i32
    %c0_i32_1 = arith.constant 0 : i32
    return %c0_i32, %c0_i32_0 : i32, i32
  }
  func.func @transform_5(%arg0: i32) -> (i32, i32, i32) {
    %c0_i32 = arith.constant 0 : i32
    %c0_i32_0 = arith.constant 0 : i32
    %c0_i32_1 = arith.constant 0 : i32
    return %arg0, %c0_i32, %c0_i32_0 : i32, i32, i32
  }
  func.func @transform_6(%arg0: i32) -> (i32, i32, i32) {
    %c0_i32 = arith.constant 0 : i32
    %c0_i32_0 = arith.constant 0 : i32
    %c0_i32_1 = arith.constant 0 : i32
    return %arg0, %c0_i32, %c0_i32_0 : i32, i32, i32
  }
}

module attributes {stable_mosaic.version = 11 : i64} {
  func.func @_conv_stage_kernel(%arg0: i32, %arg1: memref<1x16x128xf32, #tpu.memory_space<vmem>>, %arg2: memref<384x128xf32, #tpu.memory_space<vmem>>, %arg3: memref<1x128xf32, #tpu.memory_space<vmem>>, %arg4: memref<1x128xf32, #tpu.memory_space<vmem>>, %arg5: memref<1x128xf32, #tpu.memory_space<vmem>>, %arg6: memref<1x16x128xf32, #tpu.memory_space<vmem>>, %arg7: memref<1x2x128xf32, #tpu.memory_space<vmem>>) attributes {dimension_semantics = [#tpu.dimension_semantics<parallel>], iteration_bounds = array<i64: 2>, scalar_prefetch = 0 : i64, scratch_operands = 0 : i64, tpu.core_type = #tpu.core_type<tc>, window_params = [{transform_indices = @transform_0, window_bounds = array<i64: 1, 16, 128>}, {pipeline_mode = #tpu.pipeline_mode<synchronous>, transform_indices = @transform_1, window_bounds = array<i64: 384, 128>}, {pipeline_mode = #tpu.pipeline_mode<synchronous>, transform_indices = @transform_2, window_bounds = array<i64: 1, 128>}, {pipeline_mode = #tpu.pipeline_mode<synchronous>, transform_indices = @transform_3, window_bounds = array<i64: 1, 128>}, {pipeline_mode = #tpu.pipeline_mode<synchronous>, transform_indices = @transform_4, window_bounds = array<i64: 1, 128>}, {transform_indices = @transform_5, window_bounds = array<i64: 1, 16, 128>}, {transform_indices = @transform_6, window_bounds = array<i64: 1, 2, 128>}]} {
    %c0 = arith.constant 0 : index
    %c0_0 = arith.constant 0 : index
    %c0_1 = arith.constant 0 : index
    %0 = vector.load %arg1[%c0, %c0_0, %c0_1] : memref<1x16x128xf32, #tpu.memory_space<vmem>>, vector<1x16x128xf32>
    %1 = vector.shape_cast %0 : vector<1x16x128xf32> to vector<16x128xf32>
    %c0_2 = arith.constant 0 : index
    %c0_3 = arith.constant 0 : index
    %2 = vector.load %arg4[%c0_2, %c0_3] : memref<1x128xf32, #tpu.memory_space<vmem>>, vector<1x128xf32>
    %3 = vector.broadcast %2 : vector<1x128xf32> to vector<16x128xf32>
    %4 = arith.mulf %1, %3 : vector<16x128xf32>
    %c0_4 = arith.constant 0 : index
    %c0_5 = arith.constant 0 : index
    %5 = vector.load %arg5[%c0_4, %c0_5] : memref<1x128xf32, #tpu.memory_space<vmem>>, vector<1x128xf32>
    %6 = vector.broadcast %5 : vector<1x128xf32> to vector<16x128xf32>
    %7 = arith.addf %4, %6 : vector<16x128xf32>
    %cst = arith.constant 0.000000e+00 : f32
    %8 = vector.broadcast %cst : f32 to vector<16x128xf32>
    %9 = arith.maximumf %7, %8 : vector<16x128xf32>
    %c0_6 = arith.constant 0 : index
    %c0_7 = arith.constant 0 : index
    %10 = vector.load %arg2[%c0_6, %c0_7] : memref<384x128xf32, #tpu.memory_space<vmem>>, vector<128x128xf32>
    %cst_8 = arith.constant dense<0.000000e+00> : vector<16x128xf32>
    %11 = tpu.matmul %9, %10, %cst_8 {dimension_numbers = #tpu.dot_dimension_numbers<[1], [0], [0], [1], [0, 0, 1, 1], [], []>} : vector<16x128xf32>, vector<128x128xf32>, vector<16x128xf32> -> vector<16x128xf32>
    %c128 = arith.constant 128 : index
    %c0_9 = arith.constant 0 : index
    %12 = vector.load %arg2[%c128, %c0_9] : memref<384x128xf32, #tpu.memory_space<vmem>>, vector<128x128xf32>
    %cst_10 = arith.constant dense<0.000000e+00> : vector<16x128xf32>
    %13 = tpu.matmul %9, %12, %cst_10 {dimension_numbers = #tpu.dot_dimension_numbers<[1], [0], [0], [1], [0, 0, 1, 1], [], []>} : vector<16x128xf32>, vector<128x128xf32>, vector<16x128xf32> -> vector<16x128xf32>
    %c256 = arith.constant 256 : index
    %c0_11 = arith.constant 0 : index
    %14 = vector.load %arg2[%c256, %c0_11] : memref<384x128xf32, #tpu.memory_space<vmem>>, vector<128x128xf32>
    %cst_12 = arith.constant dense<0.000000e+00> : vector<16x128xf32>
    %15 = tpu.matmul %9, %14, %cst_12 {dimension_numbers = #tpu.dot_dimension_numbers<[1], [0], [0], [1], [0, 0, 1, 1], [], []>} : vector<16x128xf32>, vector<128x128xf32>, vector<16x128xf32> -> vector<16x128xf32>
    %16 = tpu.iota {dimensions = array<i32: 0>} : vector<16x16xi32>
    %17 = tpu.iota {dimensions = array<i32: 1>} : vector<16x16xi32>
    %c1_i32 = arith.constant 1 : i32
    %18 = vector.broadcast %c1_i32 : i32 to vector<16x16xi32>
    %19 = arith.addi %17, %18 : vector<16x16xi32>
    %20 = arith.cmpi eq, %16, %19 : vector<16x16xi32>
    %21 = arith.extui %20 : vector<16x16xi1> to vector<16x16xi32>
    %22 = arith.sitofp %21 : vector<16x16xi32> to vector<16x16xf32>
    %c1_i32_13 = arith.constant 1 : i32
    %23 = vector.broadcast %c1_i32_13 : i32 to vector<16x16xi32>
    %24 = arith.subi %17, %23 : vector<16x16xi32>
    %25 = arith.cmpi eq, %16, %24 : vector<16x16xi32>
    %26 = arith.extui %25 : vector<16x16xi1> to vector<16x16xi32>
    %27 = arith.sitofp %26 : vector<16x16xi32> to vector<16x16xf32>
    %cst_14 = arith.constant dense<0.000000e+00> : vector<16x128xf32>
    %28 = tpu.matmul %22, %11, %cst_14 {dimension_numbers = #tpu.dot_dimension_numbers<[1], [0], [0], [1], [0, 0, 1, 1], [], []>} : vector<16x16xf32>, vector<16x128xf32>, vector<16x128xf32> -> vector<16x128xf32>
    %29 = arith.addf %13, %28 : vector<16x128xf32>
    %cst_15 = arith.constant dense<0.000000e+00> : vector<16x128xf32>
    %30 = tpu.matmul %27, %15, %cst_15 {dimension_numbers = #tpu.dot_dimension_numbers<[1], [0], [0], [1], [0, 0, 1, 1], [], []>} : vector<16x16xf32>, vector<16x128xf32>, vector<16x128xf32> -> vector<16x128xf32>
    %31 = arith.addf %29, %30 : vector<16x128xf32>
    %c0_16 = arith.constant 0 : index
    %c0_17 = arith.constant 0 : index
    %32 = vector.load %arg3[%c0_16, %c0_17] : memref<1x128xf32, #tpu.memory_space<vmem>>, vector<1x128xf32>
    %33 = vector.broadcast %32 : vector<1x128xf32> to vector<16x128xf32>
    %34 = arith.addf %31, %33 : vector<16x128xf32>
    %cst_18 = arith.constant dense<0.000000e+00> : vector<128xf32>
    %35 = vector.multi_reduction <add>, %34, %cst_18 [0] : vector<16x128xf32> to vector<128xf32>
    %36 = vector.shape_cast %35 : vector<128xf32> to vector<1x128xf32>
    %cst_19 = arith.constant 6.250000e-02 : f32
    %37 = vector.broadcast %cst_19 : f32 to vector<1x128xf32>
    %38 = arith.mulf %36, %37 : vector<1x128xf32>
    %39 = vector.broadcast %38 : vector<1x128xf32> to vector<16x128xf32>
    %40 = arith.subf %34, %39 : vector<16x128xf32>
    %c0_20 = arith.constant 0 : index
    %c0_21 = arith.constant 0 : index
    %c0_22 = arith.constant 0 : index
    %41 = vector.load %arg7[%c0_20, %c0_21, %c0_22] : memref<1x2x128xf32, #tpu.memory_space<vmem>>, vector<1x1x128xf32>
    %42 = vector.shape_cast %41 : vector<1x1x128xf32> to vector<1x128xf32>
    %43 = vector.shape_cast %36 : vector<1x128xf32> to vector<1x1x128xf32>
    tpu.vector_store %arg7[%c0_20, %c0_21, %c0_22], %43 {strides = array<i32>} : memref<1x2x128xf32, #tpu.memory_space<vmem>>, vector<1x1x128xf32>,
    %44 = arith.mulf %40, %40 : vector<16x128xf32>
    %cst_23 = arith.constant dense<0.000000e+00> : vector<128xf32>
    %45 = vector.multi_reduction <add>, %44, %cst_23 [0] : vector<16x128xf32> to vector<128xf32>
    %46 = vector.shape_cast %45 : vector<128xf32> to vector<1x128xf32>
    %c0_24 = arith.constant 0 : index
    %c1 = arith.constant 1 : index
    %c0_25 = arith.constant 0 : index
    %47 = vector.load %arg7[%c0_24, %c1, %c0_25] : memref<1x2x128xf32, #tpu.memory_space<vmem>>, vector<1x1x128xf32>
    %48 = vector.shape_cast %47 : vector<1x1x128xf32> to vector<1x128xf32>
    %49 = vector.shape_cast %46 : vector<1x128xf32> to vector<1x1x128xf32>
    tpu.vector_store %arg7[%c0_24, %c1, %c0_25], %49 {strides = array<i32>} : memref<1x2x128xf32, #tpu.memory_space<vmem>>, vector<1x1x128xf32>,
    %c0_26 = arith.constant 0 : index
    %c0_27 = arith.constant 0 : index
    %c0_28 = arith.constant 0 : index
    %50 = vector.load %arg6[%c0_26, %c0_27, %c0_28] : memref<1x16x128xf32, #tpu.memory_space<vmem>>, vector<1x16x128xf32>
    %51 = vector.shape_cast %50 : vector<1x16x128xf32> to vector<16x128xf32>
    %52 = vector.shape_cast %34 : vector<16x128xf32> to vector<1x16x128xf32>
    tpu.vector_store %arg6[%c0_26, %c0_27, %c0_28], %52 {strides = array<i32>} : memref<1x16x128xf32, #tpu.memory_space<vmem>>, vector<1x16x128xf32>,
    return
  }
  func.func @transform_0(%arg0: i32) -> (i32, i32, i32) {
    %c0_i32 = arith.constant 0 : i32
    %c0_i32_0 = arith.constant 0 : i32
    %c0_i32_1 = arith.constant 0 : i32
    return %arg0, %c0_i32, %c0_i32_0 : i32, i32, i32
  }
  func.func @transform_1(%arg0: i32) -> (i32, i32) {
    %c0_i32 = arith.constant 0 : i32
    %c0_i32_0 = arith.constant 0 : i32
    %c0_i32_1 = arith.constant 0 : i32
    return %c0_i32, %c0_i32_0 : i32, i32
  }
  func.func @transform_2(%arg0: i32) -> (i32, i32) {
    %c0_i32 = arith.constant 0 : i32
    %c0_i32_0 = arith.constant 0 : i32
    %c0_i32_1 = arith.constant 0 : i32
    return %c0_i32, %c0_i32_0 : i32, i32
  }
  func.func @transform_3(%arg0: i32) -> (i32, i32) {
    %c0_i32 = arith.constant 0 : i32
    %c0_i32_0 = arith.constant 0 : i32
    %c0_i32_1 = arith.constant 0 : i32
    return %c0_i32, %c0_i32_0 : i32, i32
  }
  func.func @transform_4(%arg0: i32) -> (i32, i32) {
    %c0_i32 = arith.constant 0 : i32
    %c0_i32_0 = arith.constant 0 : i32
    %c0_i32_1 = arith.constant 0 : i32
    return %c0_i32, %c0_i32_0 : i32, i32
  }
  func.func @transform_5(%arg0: i32) -> (i32, i32, i32) {
    %c0_i32 = arith.constant 0 : i32
    %c0_i32_0 = arith.constant 0 : i32
    %c0_i32_1 = arith.constant 0 : i32
    return %arg0, %c0_i32, %c0_i32_0 : i32, i32, i32
  }
  func.func @transform_6(%arg0: i32) -> (i32, i32, i32) {
    %c0_i32 = arith.constant 0 : i32
    %c0_i32_0 = arith.constant 0 : i32
    %c0_i32_1 = arith.constant 0 : i32
    return %arg0, %c0_i32, %c0_i32_0 : i32, i32, i32
  }
}

module attributes {stable_mosaic.version = 11 : i64} {
  func.func @_bn_relu_kernel(%arg0: i32, %arg1: memref<1x16x128xf32, #tpu.memory_space<vmem>>, %arg2: memref<1x128xf32, #tpu.memory_space<vmem>>, %arg3: memref<1x128xf32, #tpu.memory_space<vmem>>, %arg4: memref<1x16x128xf32, #tpu.memory_space<vmem>>) attributes {dimension_semantics = [#tpu.dimension_semantics<parallel>], iteration_bounds = array<i64: 2>, scalar_prefetch = 0 : i64, scratch_operands = 0 : i64, tpu.core_type = #tpu.core_type<tc>, window_params = [{transform_indices = @transform_0, window_bounds = array<i64: 1, 16, 128>}, {pipeline_mode = #tpu.pipeline_mode<synchronous>, transform_indices = @transform_1, window_bounds = array<i64: 1, 128>}, {pipeline_mode = #tpu.pipeline_mode<synchronous>, transform_indices = @transform_2, window_bounds = array<i64: 1, 128>}, {transform_indices = @transform_3, window_bounds = array<i64: 1, 16, 128>}]} {
    %c0 = arith.constant 0 : index
    %c0_0 = arith.constant 0 : index
    %c0_1 = arith.constant 0 : index
    %0 = vector.load %arg1[%c0, %c0_0, %c0_1] : memref<1x16x128xf32, #tpu.memory_space<vmem>>, vector<1x16x128xf32>
    %1 = vector.shape_cast %0 : vector<1x16x128xf32> to vector<16x128xf32>
    %c0_2 = arith.constant 0 : index
    %c0_3 = arith.constant 0 : index
    %2 = vector.load %arg2[%c0_2, %c0_3] : memref<1x128xf32, #tpu.memory_space<vmem>>, vector<1x128xf32>
    %3 = vector.broadcast %2 : vector<1x128xf32> to vector<16x128xf32>
    %4 = arith.mulf %1, %3 : vector<16x128xf32>
    %c0_4 = arith.constant 0 : index
    %c0_5 = arith.constant 0 : index
    %5 = vector.load %arg3[%c0_4, %c0_5] : memref<1x128xf32, #tpu.memory_space<vmem>>, vector<1x128xf32>
    %6 = vector.broadcast %5 : vector<1x128xf32> to vector<16x128xf32>
    %7 = arith.addf %4, %6 : vector<16x128xf32>
    %cst = arith.constant 0.000000e+00 : f32
    %8 = vector.broadcast %cst : f32 to vector<16x128xf32>
    %9 = arith.maximumf %7, %8 : vector<16x128xf32>
    %c0_6 = arith.constant 0 : index
    %c0_7 = arith.constant 0 : index
    %c0_8 = arith.constant 0 : index
    %10 = vector.load %arg4[%c0_6, %c0_7, %c0_8] : memref<1x16x128xf32, #tpu.memory_space<vmem>>, vector<1x16x128xf32>
    %11 = vector.shape_cast %10 : vector<1x16x128xf32> to vector<16x128xf32>
    %12 = vector.shape_cast %9 : vector<16x128xf32> to vector<1x16x128xf32>
    tpu.vector_store %arg4[%c0_6, %c0_7, %c0_8], %12 {strides = array<i32>} : memref<1x16x128xf32, #tpu.memory_space<vmem>>, vector<1x16x128xf32>,
    return
  }
  func.func @transform_0(%arg0: i32) -> (i32, i32, i32) {
    %c0_i32 = arith.constant 0 : i32
    %c0_i32_0 = arith.constant 0 : i32
    %c0_i32_1 = arith.constant 0 : i32
    return %arg0, %c0_i32, %c0_i32_0 : i32, i32, i32
  }
  func.func @transform_1(%arg0: i32) -> (i32, i32) {
    %c0_i32 = arith.constant 0 : i32
    %c0_i32_0 = arith.constant 0 : i32
    %c0_i32_1 = arith.constant 0 : i32
    return %c0_i32, %c0_i32_0 : i32, i32
  }
  func.func @transform_2(%arg0: i32) -> (i32, i32) {
    %c0_i32 = arith.constant 0 : i32
    %c0_i32_0 = arith.constant 0 : i32
    %c0_i32_1 = arith.constant 0 : i32
    return %c0_i32, %c0_i32_0 : i32, i32
  }
  func.func @transform_3(%arg0: i32) -> (i32, i32, i32) {
    %c0_i32 = arith.constant 0 : i32
    %c0_i32_0 = arith.constant 0 : i32
    %c0_i32_1 = arith.constant 0 : i32
    return %arg0, %c0_i32, %c0_i32_0 : i32, i32, i32
  }
}

</mosaic_0001>

<bundles_post_ra>
// kernel: tile.33
= control target key start
LH: loop header
LB: loop body
LE: loop exit
PB: predicated region body
PF: predicated region fallthrough
CT: control target
= control target key end

     0   :  { %s28_s0 = inlined_call_operand.vmem [shape: f32[8], index: 0, kind: input, shape index: {}]   ;;  %s29_s1 = inlined_call_operand.vmem [shape: f32[16,8], index: 1, kind: output, shape index: {}]  }
   0x1   :  { %v4_v0 = vld [vmem:[%s28_s0] ss:$0 sm:$0xff] }
   0x2   :  { %5 = vst [vmem:[%s29_s1] sm:$0xff] %v4_v0  ;;  %8 = vst [vmem:[%s29_s1 + $0x8] sm:$0xff] %v4_v0 }

// kernel: tile.34
= control target key start
LH: loop header
LB: loop body
LE: loop exit
PB: predicated region body
PF: predicated region fallthrough
CT: control target
= control target key end

     0   :  { %s131_s10 = smov 120   ;;  %s132_s11 = smov 104   ;;  %vm3_vm0 = vcmask 64512   ;;  %vm9_vm1 = vcmask 1048512   ;;  %vm15_vm2 = vcmask 982912   ;;  %vm21_vm3 = vcmask 917312   ;;  %s207_s0 = inlined_call_operand.vmem [shape: f32[16,8], index: 0, kind: input, shape index: {}]   ;;  %s208_s1 = inlined_call_operand.vmem [shape: f32[1,128], index: 1, kind: output, shape index: {}]  }
   0x1   :  { %v101_v0 = vld [vmem:[%s207_s0 + $0xf] sm:$0x1]   ;;  %v103_v1 = vld [vmem:[%s207_s0 + $0xd] sm:$0x1]   ;;  %v102_v2 = vld [vmem:[%s207_s0 + $0xe] sm:$0x1]  }
   0x2   :  { %7 = vrot.lane.b32.xlu0 %v101_v0, %s131_s10  ;;  %19 = vrot.lane.b32.xlu1 %v103_v1, %s132_s11  ;;  %v104_v3 = vld [vmem:[%s207_s0 + $0xc] sm:$0x1]   ;;  %s133_s16 = smov 112   ;;  %s134_s17 = smov 96   ;;  %v105_v4 = vld [vmem:[%s207_s0 + $0xb] sm:$0x1]  }
   0x3   :  { %v106_v5 = vld [vmem:[%s207_s0 + $0xa] sm:$0x1]   ;;  %v2_v6 = vld [vmem:[%s207_s0] sm:$0x1]   ;;  %s135_s24 = smov 88   ;;  %s136_s25 = smov 80  }
   0x4   :  { %4 = vst.msk [vmem:[#allocation0] sm:$0x1] %vm3_vm0, %v2_v6   ;;  %v107_v7 = vld [vmem:[%s207_s0 + $0x9] sm:$0x1]   ;;  %v108_v8 = vld [vmem:[%s207_s0 + $0x8] sm:$0x1]  }
   0x5   :  { %s137_s30 = smov 72   ;;  %s138_s2 = smov 64   ;;  %v109_v9 = vld [vmem:[%s207_s0 + $0x7] sm:$0x1]   ;;  %v110_v10 = vld [vmem:[%s207_s0 + $0x6] sm:$0x1]  }
   0x6   :  { %13 = vrot.lane.b32.xlu0 %v102_v2, %s133_s16  ;;  %25 = vrot.lane.b32.xlu1 %v104_v3, %s134_s17  ;;  %s139_s7 = smov 56   ;;  %s140_s8 = smov 48   ;;  %v111_v11 = vld [vmem:[%s207_s0 + $0x5] sm:$0x1]   ;;  %v112_v12 = vld [vmem:[%s207_s0 + $0x4] sm:$0x1]  }
   0x7   :  { %s141_s13 = smov 40   ;;  %s142_s14 = smov 32   ;;  %v113_v13 = vld [vmem:[%s207_s0 + $0x3] sm:$0x1]   ;;  %v114_v14 = vld [vmem:[%s207_s0 + $0x2] sm:$0x1]  }
   0x8   :  { %s143_s19 = smov 24   ;;  %s144_s20 = smov 16   ;;  %v115_v15 = vld [vmem:[%s207_s0 + $0x1] sm:$0x1]   ;;  %vm27_vm4 = vcmask 851712   ;;  %vm33_vm5 = vcmask 786112  }
   0x9   :  { %s145_s0 = smov 8   ;;  %vm39_vm6 = vcmask 720512   ;;  %vm45_vm7 = vcmask 654912   ;;  %vm51_vm8 = vcmask 589312   ;;  %vm57_vm9 = vcmask 523712  }
   0xa   :  { %31 = vrot.lane.b32.xlu0 %v105_v4, %s135_s24  ;;  %37 = vrot.lane.b32.xlu1 %v106_v5, %s136_s25  ;;  %vm63_vm10 = vcmask 458112   ;;  %vm69_vm11 = vcmask 392512   ;;  %vm75_vm12 = vcmask 326912   ;;  %vm81_vm13 = vcmask 261312  }
   0xb   :  { %vm87_vm14 = vcmask 195712   ;;  %vm93_vm15 = vcmask 130112  }
   0xe   :  { %43 = vrot.lane.b32.xlu0 %v107_v7, %s137_s30  ;;  %49 = vrot.lane.b32.xlu1 %v108_v8, %s138_s2 }
  0x12   :  { %55 = vrot.lane.b32.xlu0 %v109_v9, %s139_s7  ;;  %61 = vrot.lane.b32.xlu1 %v110_v10, %s140_s8 }
  0x16   :  { %67 = vrot.lane.b32.xlu0 %v111_v11, %s141_s13  ;;  %73 = vrot.lane.b32.xlu1 %v112_v12, %s142_s14 }
  0x1a   :  { %79 = vrot.lane.b32.xlu0 %v113_v13, %s143_s19  ;;  %85 = vrot.lane.b32.xlu1 %v114_v14, %s144_s20 }
  0x1e   :  { %91 = vrot.lane.b32.xlu0 %v115_v15, %s145_s0 }
  0x74   :  { %v8_v16 = vpop.permute.xlu0 %7   ;;  %v20_v17 = vpop.permute.xlu1 %19  }
  0x75   :  { %10 = vst.msk [vmem:[#allocation0] sm:$0x1] %vm9_vm1, %v8_v16  }
  0x78   :  { %v14_v18 = vpop.permute.xlu0 %13   ;;  %v26_v19 = vpop.permute.xlu1 %25  }
  0x79   :  { %16 = vst.msk [vmem:[#allocation0] sm:$0x1] %vm15_vm2, %v14_v18  }
  0x7a   :  { %22 = vst.msk [vmem:[#allocation0] sm:$0x1] %vm21_vm3, %v20_v17  }
  0x7b   :  { %28 = vst.msk [vmem:[#allocation0] sm:$0x1] %vm27_vm4, %v26_v19  }
  0x7c   :  { %v32_v20 = vpop.permute.xlu0 %31   ;;  %v38_v21 = vpop.permute.xlu1 %37  }
  0x7d   :  { %34 = vst.msk [vmem:[#allocation0] sm:$0x1] %vm33_vm5, %v32_v20  }
  0x7e   :  { %40 = vst.msk [vmem:[#allocation0] sm:$0x1] %vm39_vm6, %v38_v21  }
  0x80   :  { %v44_v22 = vpop.permute.xlu0 %43   ;;  %v50_v23 = vpop.permute.xlu1 %49  }
  0x81   :  { %46 = vst.msk [vmem:[#allocation0] sm:$0x1] %vm45_vm7, %v44_v22  }
  0x82   :  { %52 = vst.msk [vmem:[#allocation0] sm:$0x1] %vm51_vm8, %v50_v23  }
  0x84   :  { %v56_v24 = vpop.permute.xlu0 %55   ;;  %v62_v25 = vpop.permute.xlu1 %61  }
  0x85   :  { %58 = vst.msk [vmem:[#allocation0] sm:$0x1] %vm57_vm9, %v56_v24  }
  0x86   :  { %64 = vst.msk [vmem:[#allocation0] sm:$0x1] %vm63_vm10, %v62_v25  }
  0x88   :  { %v68_v26 = vpop.permute.xlu0 %67   ;;  %v74_v27 = vpop.permute.xlu1 %73  }
  0x89   :  { %70 = vst.msk [vmem:[#allocation0] sm:$0x1] %vm69_vm11, %v68_v26  }
  0x8a   :  { %76 = vst.msk [vmem:[#allocation0] sm:$0x1] %vm75_vm12, %v74_v27  }
  0x8c   :  { %v80_v28 = vpop.permute.xlu0 %79   ;;  %v86_v29 = vpop.permute.xlu1 %85  }
  0x8d   :  { %82 = vst.msk [vmem:[#allocation0] sm:$0x1] %vm81_vm13, %v80_v28  }
  0x8e   :  { %88 = vst.msk [vmem:[#allocation0] sm:$0x1] %vm87_vm14, %v86_v29  }
  0x90   :  { %v92_v30 = vpop.permute.xlu0 %91  }
  0x91   :  { %94 = vst.msk [vmem:[#allocation0] sm:$0x1] %vm93_vm15, %v92_v30  }
  0x98   :  { %v98_v31 = vld [vmem:[#allocation0] sm:$0x1] }
  0x99   :  { %100 = vst [vmem:[%s208_s1] sm:$0x1] %v98_v31 }

// kernel: conv_block_forward.3
= control target key start
LH: loop header
LB: loop body
LE: loop exit
PB: predicated region body
PF: predicated region fallthrough
CT: control target
= control target key end

     0   :  { %s1075_s21 = smov 0   ;;  %s1198_s0 = inlined_call_operand.vmem [shape: f32[2,16,64], index: 0, kind: input, shape index: {}]   ;;  %s1199_s1 = inlined_call_operand.vmem [shape: f32[192,128], index: 1, kind: input, shape index: {}]   ;;  %s1200_s2 = inlined_call_operand.vmem [shape: f32[1,128], index: 2, kind: input, shape index: {}]   ;;  %s1201_s3 = inlined_call_operand.vmem [shape: f32[1,64], index: 3, kind: input, shape index: {}]   ;;  %s1202_s4 = inlined_call_operand.vmem [shape: f32[1,64], index: 4, kind: input, shape index: {}]   ;;  %s1203_s5 = inlined_call_operand.vmem [shape: f32[2,16,128], index: 5, kind: output, shape index: {0}]   ;;  %s1204_s6 = inlined_call_operand.vmem [shape: f32[2,2,128], index: 6, kind: output, shape index: {1}]  }
   0x1 LB: > { %s823_s3 = sadd.s32 4294967295, %s1037_s21   ;;  %p827_p0 = scmp.ge.s32.totalorder %s1037_s21, 1  ;;  %s1037_s21 = sphi %s1075_s21, %s17_s21  }
   0x2   : > { %p215_p1 = scmp.lt.s32.totalorder %s1037_s21, 3 }
   0x4   : > { %p216_p2 = pnand %p827_p0, %p215_p1 }
   0x5   : > { %v265_v0 = vld [vmem:[%s1199_s1] sm:$0xff] (!%p216_p2)  ;;  %v266_v1 = vld [vmem:[%s1199_s1 + $0x8] sm:$0xff] (!%p216_p2)  ;;  %v267_v2 = vld [vmem:[%s1199_s1 + $0x10] sm:$0xff] (!%p216_p2)  ;;  %p249_p3 = scmp.lt.s32.totalorder (!%p216_p2), %s823_s3, 1  ;;  %vm273_vm0 = vcmask (!%p216_p2), 523264   ;;  %v446_v26 = vlaneseq (!%p216_p2)  ;;  %vm465_vm1 = vcmask (!%p216_p2), 130048  }
   0x6   : > { %219 = sbr.rel (%p216_p2) target bundleno = 517 (0x205), region = 40  ;;  %v962_v3 = vpack.c.bf16 (!%p216_p2), %v266_v1, %v265_v0  ;;  %v268_v4 = vld [vmem:[%s1199_s1 + $0x18] sm:$0xff] (!%p216_p2)  ;;  %v269_v6 = vld [vmem:[%s1199_s1 + $0x20] sm:$0xff] (!%p216_p2)  ;;  %v270_v7 = vld [vmem:[%s1199_s1 + $0x28] sm:$0xff] (!%p216_p2)  ;;  %v1039_v31 = vmov (!%p216_p2), 0.0  }
   0x7   : > { %v966_v5 = vpack.c.bf16 (!%p216_p2), %v268_v4, %v267_v2  ;;  %v970_v8 = vpack.c.bf16 (!%p216_p2), %v270_v7, %v269_v6  ;;  %v271_v9 = vld [vmem:[%s1199_s1 + $0x30] sm:$0xff] (!%p216_p2)  ;;  %v272_v10 = vld [vmem:[%s1199_s1 + $0x38] sm:$0xff] (!%p216_p2)  ;;  %v363_v13 = vld [vmem:[%s1199_s1 + $0x80] sm:$0xff] (!%p216_p2)  ;;  %v450_v27 = vand.u32 (!%p216_p2), 127, %v446_v26  ;;  %v447_v28 = vshrl.u32 (!%p216_p2), %v446_v26, 7 }
   0x8   : > { %963 = vmatprep.subr.bf16.mxu1 (!%p216_p2), %v962_v3  ;;  %v974_v12 = vpack.c.bf16 (!%p216_p2), %v272_v10, %v271_v9  ;;  %v364_v14 = vld [vmem:[%s1199_s1 + $0x88] sm:$0xff] (!%p216_p2)  ;;  %v365_v16 = vld [vmem:[%s1199_s1 + $0x90] sm:$0xff] (!%p216_p2)  ;;  %v366_v17 = vld [vmem:[%s1199_s1 + $0x98] sm:$0xff] (!%p216_p2) }
   0x9   : > { %965 = vmatpush3.bf16.msra.mxu1 (!%p216_p2), %v962_v3  ;;  %v978_v15 = vpack.c.bf16 (!%p216_p2), %v364_v14, %v363_v13  ;;  %v982_v19 = vpack.c.bf16 (!%p216_p2), %v366_v17, %v365_v16  ;;  %v367_v20 = vld [vmem:[%s1199_s1 + $0xa0] sm:$0xff] (!%p216_p2)  ;;  %v368_v21 = vld [vmem:[%s1199_s1 + $0xa8] sm:$0xff] (!%p216_p2)  ;;  %v369_v23 = vld [vmem:[%s1199_s1 + $0xb0] sm:$0xff] (!%p216_p2)  ;;  %v451_v29 = vadd.s32 (!%p216_p2), 1, %v450_v27  ;;  %v448_v30 = vadd.s32 (!%p216_p2), 8, %v447_v28 }
   0xa   : > { %967 = vmatprep.subr.bf16.mxu1 (!%p216_p2), %v966_v5  ;;  %v986_v22 = vpack.c.bf16 (!%p216_p2), %v368_v21, %v367_v20  ;;  %v370_v24 = vld [vmem:[%s1199_s1 + $0xb8] sm:$0xff] (!%p216_p2)  ;;  %v839_v34 = vadd.s32 (!%p216_p2), 4294967295, %v450_v27  ;;  %v355_v37 = vld [vmem:[%s1199_s1 + $0x40] sm:$0xff] (!%p216_p2)  ;;  %v356_v38 = vld [vmem:[%s1199_s1 + $0x48] sm:$0xff] (!%p216_p2) }
   0xb   : > { %v990_v25 = vpack.c.bf16 (!%p216_p2), %v370_v24, %v369_v23  ;;  %vm452_vm2 = vcmp.eq.s32.totalorder (!%p216_p2), %v447_v28, %v451_v29  ;;  %vm453_vm3 = vcmp.eq.s32.totalorder (!%p216_p2), %v448_v30, %v451_v29  ;;  %v998_v42 = vpack.c.bf16 (!%p216_p2), %v356_v38, %v355_v37  ;;  %v357_v43 = vld [vmem:[%s1199_s1 + $0x50] sm:$0xff] (!%p216_p2)  ;;  %v358_v44 = vld [vmem:[%s1199_s1 + $0x58] sm:$0xff] (!%p216_p2)  ;;  %v359_v46 = vld [vmem:[%s1199_s1 + $0x60] sm:$0xff] (!%p216_p2) }
   0xc   : > { %v837_v32 = vsel (!%p216_p2), %vm452_vm2, 1.0, %v1039_v31  ;;  %v838_v33 = vsel (!%p216_p2), %vm453_vm3, 1.0, %v1039_v31  ;;  %vm459_vm4 = vcmp.eq.s32.totalorder (!%p216_p2), %v447_v28, %v839_v34  ;;  %vm460_vm5 = vcmp.eq.s32.totalorder (!%p216_p2), %v448_v30, %v839_v34  ;;  %v360_v47 = vld [vmem:[%s1199_s1 + $0x68] sm:$0xff] (!%p216_p2)  ;;  %v361_v49 = vld [vmem:[%s1199_s1 + $0x70] sm:$0xff] (!%p216_p2)  ;;  %v362_v50 = vld [vmem:[%s1199_s1 + $0x78] sm:$0xff] (!%p216_p2) }
   0xd   : > { %s1206_s3 = smov (!%p249_p3, %s823_s3), 1  ;;  %969 = vmatpush3.bf16.msra.mxu1 %v966_v5  ;;  %933 = vmatprep.mubr.msk.f32.mxu0 %vm465_vm1, %v837_v32  ;;  %v840_v35 = vsel %vm459_vm4, 1.0, %v1039_v31  ;;  %v841_v36 = vsel %vm460_vm5, 1.0, %v1039_v31  ;;  %v1002_v45 = vpack.c.bf16 %v358_v44, %v357_v43  ;;  %v1006_v48 = vpack.c.bf16 %v360_v47, %v359_v46  ;;  %v848_v55 = vld [vmem:[%s1200_s2] ss:$0 sm:$0xff] }
   0xe   : > { %s851_s9 = sshll.u32 %s1206_s3, 4  ;;  %971 = vmatprep.subr.bf16.mxu1 %v970_v8  ;;  %v1010_v51 = vpack.c.bf16 %v362_v50, %v361_v49  ;;  %s832_s7 = sshll.u32 %s1206_s3, 1 }
   0xf   : > { %s253_s12 = scalar_lea.vmem %s1198_s0, %s851_s9  ;;  %s258_s30 = scalar_lea.vmem %s1203_s5, %s851_s9 }
  0x10   : > { %v1115_v11 = vld [vmem:[%s253_s12] sm:$0xff]  ;;  %v1131_v18 = vld [vmem:[%s253_s12 + $0x8] sm:$0xff]  ;;  %s262_s11 = scalar_lea.vmem %s1204_s6, %s832_s7 }
  0x11   : > { %907 = vmatprep.mubr.msk.f32.mxu1 %vm273_vm0, %v1115_v11  ;;  %973 = vmatpush3.bf16.msra.mxu1 %v970_v8 }
  0x12   : > { %975 = vmatprep.subr.bf16.mxu1 %v974_v12 }
  0x15   : > { %977 = vmatpush3.bf16.msra.mxu1 %v974_v12 }
  0x16   : > { %979 = vmatprep.subr.bf16.mxu1 %v978_v15 }
  0x18   : > { %908 = vmatmul.mubr.msk.f32.vlgmr.msra.gmra.mrb[0].mxu1 %vm273_vm0, %v1131_v18 }
  0x19   : > { %981 = vmatpush3.bf16.msra.mxu1 %v978_v15  ;;  %926 = vmatprep.mubr.msk.f32.mxu1 %vm273_vm0, %v1115_v11 }
  0x1a   : > { %983 = vmatprep.subr.bf16.mxu1 %v982_v19 }
  0x1d   : > { %985 = vmatpush3.bf16.msra.mxu1 %v982_v19 }
  0x1e   : > { %987 = vmatprep.subr.bf16.mxu1 %v986_v22 }
  0x21   : > { %989 = vmatpush3.bf16.msra.mxu1 %v986_v22 }
  0x22   : > { %991 = vmatprep.subr.bf16.mxu1 %v990_v25 }
  0x25   : > { %993 = vmatpush3.bf16.msra.mxu1 %v990_v25 }
  0x28   : > { %927 = vmatmul.mubr.msk.f32.vlgmr.msra.gmra.mrb[2].mxu1 %vm273_vm0, %v1131_v18 }
  0xeb   : > { %v909_v39 = vpop.f32.mrb[0].mxu1 }
  0xec   : > { %v346_v40 = vpop.f32.mrb[1].mxu1 }
  0xed   : > { %v994_v41 = vpack.c.bf16 %v909_v39, %v346_v40 }
  0xef   : > { %995 = vmatprep.subr.bf16.mxu0 %v994_v41 }
  0xf0   : > { %997 = vmatpush3.bf16.msra.mxu0 %v994_v41 }
  0xf1   : > { %999 = vmatprep.subr.bf16.mxu0 %v998_v42 }
  0xf3   : > { %934 = vmatmul.mubr.msk.f32.vlgmr.msra.gmra.mrb[0].mxu0 %vm465_vm1, %v838_v33 }
  0xf4   : > { %1001 = vmatpush3.bf16.msra.mxu0 %v998_v42  ;;  %952 = vmatprep.mubr.msk.f32.mxu0 %vm273_vm0, %v1115_v11 }
  0xf5   : > { %1003 = vmatprep.subr.bf16.mxu0 %v1002_v45 }
  0xf8   : > { %1005 = vmatpush3.bf16.msra.mxu0 %v1002_v45 }
  0xf9   : > { %1007 = vmatprep.subr.bf16.mxu0 %v1006_v48 }
  0xfb   : > { %v928_v52 = vpop.f32.mrb[2].mxu1 }
  0xfc   : > { %1009 = vmatpush3.bf16.msra.mxu0 %v1006_v48  ;;  %v437_v53 = vpop.f32.mrb[3].mxu1 }
  0xfd   : > { %v1014_v54 = vpack.c.bf16 %v928_v52, %v437_v53  ;;  %1011 = vmatprep.subr.bf16.mxu0 %v1010_v51 }
 0x100   : > { %1013 = vmatpush3.bf16.msra.mxu0 %v1010_v51 }
 0x101   : > { %1015 = vmatprep.subr.bf16.mxu0 %v1014_v54 }
 0x103   : > { %953 = vmatmul.mubr.msk.f32.vlgmr.msra.gmra.mrb[0].mxu0 %vm273_vm0, %v1131_v18 }
 0x104   : > { %1017 = vmatpush3.bf16.msra.mxu0 %v1014_v54  ;;  %959 = vmatprep.mubr.msk.f32.mxu0 %vm465_vm1, %v840_v35 }
 0x10b   : > { %960 = vmatmul.mubr.msk.f32.vlgmr.msra.gmra.mrb[0].mxu0 %vm465_vm1, %v841_v36 }
 0x1de   : > { %v961_v56 = vpop.f32.mrb[0].mxu0 }
 0x1df   : > { %v713_v57 = vadd.f32 %v961_v56, %v848_v55  ;;  %v694_v58 = vpop.f32.mrb[1].mxu0 }
 0x1e0   : > { %v712_v59 = vadd.f32 %v848_v55, %v694_v58 }
 0x1e1   : > { %736 = vst [vmem:[%s258_s30 + $0x8] sm:$0xff] %v713_v57 }
 0x1e2   : > { %v714_v60 = vadd.f32 %v713_v57, %v712_v59  ;;  %735 = vst [vmem:[%s258_s30] sm:$0xff] %v712_v59 }
 0x1e4   : > { %v715_v61 = vrot.slane %v714_v60, 4 }
 0x1e6   : > { %v716_v62 = vadd.f32 %v715_v61, %v714_v60 }
 0x1e8   : > { %v717_v63 = vrot.slane %v716_v62, 2 }
 0x1ea   : > { %v718_v0 = vadd.f32 %v717_v63, %v716_v62 }
 0x1ec   : > { %v719_v1 = vrot.slane %v718_v0, 1 }
 0x1ee   : > { %v720_v2 = vadd.f32 %v719_v1, %v718_v0 }
 0x1f0   : > { %v721_v3 = vmul.f32 0.0625, %v720_v2  ;;  %724 = vst [vmem:[%s262_s11] sm:$0x1] %v720_v2 }
 0x1f2   : > { %v722_v4 = vsub.f32 %v712_v59, %v721_v3  ;;  %v723_v5 = vsub.f32 %v713_v57, %v721_v3 }
 0x1f4   : > { %v725_v6 = vmul.f32 %v722_v4, %v722_v4  ;;  %v726_v7 = vmul.f32 %v723_v5, %v723_v5 }
 0x1f6   : > { %v727_v8 = vadd.f32 %v726_v7, %v725_v6 }
 0x1f8   : > { %v728_v9 = vrot.slane %v727_v8, 4 }
 0x1fa   : > { %v729_v10 = vadd.f32 %v728_v9, %v727_v8 }
 0x1fc   : > { %v730_v11 = vrot.slane %v729_v10, 2 }
 0x1fe   : > { %v731_v12 = vadd.f32 %v730_v11, %v729_v10 }
 0x200   : > { %v732_v13 = vrot.slane %v731_v12, 1 }
 0x202   : > { %v733_v14 = vadd.f32 %v732_v13, %v731_v12 }
 0x204   : > { %734 = vst [vmem:[%s262_s11 + $0x1] sm:$0x1] %v733_v14 }
 0x205 PF: > { %s17_s21 = sadd.s32 1, %s1037_s21  }
 0x206   : > { %p14_p4 = scmp.ge.s32.totalorder %s17_s21, 4  }
 0x208   :  { %16 = sbr.rel (!%p14_p4) target bundleno = 1 (0x1), region = 82 }

// kernel: conv_block_forward.4
= control target key start
LH: loop header
LB: loop body
LE: loop exit
PB: predicated region body
PF: predicated region fallthrough
CT: control target
= control target key end

     0   :  { %s1228_s21 = smov 0   ;;  %s1423_s0 = inlined_call_operand.vmem [shape: f32[2,16,128], index: 0, kind: input, shape index: {}]   ;;  %s1424_s1 = inlined_call_operand.vmem [shape: f32[384,128], index: 1, kind: input, shape index: {}]   ;;  %s1425_s2 = inlined_call_operand.vmem [shape: f32[1,128], index: 2, kind: input, shape index: {}]   ;;  %s1426_s3 = inlined_call_operand.vmem [shape: f32[1,128], index: 3, kind: input, shape index: {}]   ;;  %s1427_s4 = inlined_call_operand.vmem [shape: f32[1,128], index: 4, kind: input, shape index: {}]   ;;  %s1428_s5 = inlined_call_operand.vmem [shape: f32[2,16,128], index: 5, kind: output, shape index: {0}]   ;;  %s1429_s6 = inlined_call_operand.vmem [shape: f32[2,2,128], index: 6, kind: output, shape index: {1}]  }
   0x1 LB: > { %s860_s22 = sadd.s32 4294967295, %s1190_s21   ;;  %p864_p0 = scmp.ge.s32.totalorder %s1190_s21, 1  ;;  %s1190_s21 = sphi %s1228_s21, %s17_s21  }
   0x2   : > { %p215_p1 = scmp.lt.s32.totalorder %s1190_s21, 3 }
   0x4   : > { %p216_p2 = pnand %p864_p0, %p215_p1 }
   0x5   : > { %v285_v0 = vld [vmem:[%s1424_s1] sm:$0xff] (!%p216_p2)  ;;  %v286_v1 = vld [vmem:[%s1424_s1 + $0x8] sm:$0xff] (!%p216_p2)  ;;  %v287_v2 = vld [vmem:[%s1424_s1 + $0x10] sm:$0xff] (!%p216_p2)  ;;  %p249_p3 = scmp.lt.s32.totalorder (!%p216_p2), %s860_s22, 1  ;;  %v483_v58 = vlaneseq (!%p216_p2)  ;;  %vm502_vm0 = vcmask (!%p216_p2), 130048   ;;  %v1192_v63 = vmov (!%p216_p2), 0.0  }
   0x6   : > { %219 = sbr.rel (%p216_p2) target bundleno = 549 (0x225), region = 40  ;;  %v1067_v3 = vpack.c.bf16 (!%p216_p2), %v286_v1, %v285_v0  ;;  %v288_v4 = vld [vmem:[%s1424_s1 + $0x18] sm:$0xff] (!%p216_p2)  ;;  %v289_v6 = vld [vmem:[%s1424_s1 + $0x20] sm:$0xff] (!%p216_p2)  ;;  %v290_v7 = vld [vmem:[%s1424_s1 + $0x28] sm:$0xff] (!%p216_p2) }
   0x7   : > { %v1071_v5 = vpack.c.bf16 (!%p216_p2), %v288_v4, %v287_v2  ;;  %v1075_v8 = vpack.c.bf16 (!%p216_p2), %v290_v7, %v289_v6  ;;  %v291_v9 = vld [vmem:[%s1424_s1 + $0x30] sm:$0xff] (!%p216_p2)  ;;  %v870_v10 = vld [vmem:[%s1426_s3] ss:$0 sm:$0xff] (!%p216_p2)  ;;  %v292_v11 = vld [vmem:[%s1424_s1 + $0x38] sm:$0xff] (!%p216_p2)  ;;  %v487_v59 = vand.u32 (!%p216_p2), 127, %v483_v58  ;;  %v484_v60 = vshrl.u32 (!%p216_p2), %v483_v58, 7 }
   0x8   : > { %1068 = vmatprep.subr.bf16.mxu1 (!%p216_p2), %v1067_v3  ;;  %v871_v13 = vld [vmem:[%s1427_s4] ss:$0 sm:$0xff] (!%p216_p2)  ;;  %v1079_v15 = vpack.c.bf16 (!%p216_p2), %v292_v11, %v291_v9  ;;  %v294_v18 = vld [vmem:[%s1424_s1 + $0x48] sm:$0xff] (!%p216_p2)  ;;  %v295_v21 = vld [vmem:[%s1424_s1 + $0x50] sm:$0xff] (!%p216_p2) }
   0x9   : > { %1070 = vmatpush3.bf16.msra.mxu1 (!%p216_p2), %v1067_v3  ;;  %v293_v17 = vld [vmem:[%s1424_s1 + $0x40] sm:$0xff] (!%p216_p2)  ;;  %v296_v22 = vld [vmem:[%s1424_s1 + $0x58] sm:$0xff] (!%p216_p2)  ;;  %v298_v25 = vld [vmem:[%s1424_s1 + $0x68] sm:$0xff] (!%p216_p2)  ;;  %v488_v61 = vadd.s32 (!%p216_p2), 1, %v487_v59  ;;  %v485_v62 = vadd.s32 (!%p216_p2), 8, %v484_v60  ;;  %v874_v2 = vadd.s32 (!%p216_p2), 4294967295, %v487_v59 }
   0xa   : > { %1072 = vmatprep.subr.bf16.mxu1 (!%p216_p2), %v1071_v5  ;;  %v1083_v20 = vpack.c.bf16 (!%p216_p2), %v294_v18, %v293_v17  ;;  %v1087_v23 = vpack.c.bf16 (!%p216_p2), %v296_v22, %v295_v21  ;;  %v297_v24 = vld [vmem:[%s1424_s1 + $0x60] sm:$0xff] (!%p216_p2)  ;;  %v299_v28 = vld [vmem:[%s1424_s1 + $0x70] sm:$0xff] (!%p216_p2)  ;;  %v300_v29 = vld [vmem:[%s1424_s1 + $0x78] sm:$0xff] (!%p216_p2) }
   0xb   : > { %v1091_v27 = vpack.c.bf16 (!%p216_p2), %v298_v25, %v297_v24  ;;  %v1095_v31 = vpack.c.bf16 (!%p216_p2), %v300_v29, %v299_v28  ;;  %v392_v32 = vld [vmem:[%s1424_s1 + $0x100] sm:$0xff] (!%p216_p2)  ;;  %v393_v33 = vld [vmem:[%s1424_s1 + $0x108] sm:$0xff] (!%p216_p2)  ;;  %v394_v36 = vld [vmem:[%s1424_s1 + $0x110] sm:$0xff] (!%p216_p2)  ;;  %vm489_vm1 = vcmp.eq.s32.totalorder (!%p216_p2), %v484_v60, %v488_v61  ;;  %vm490_vm2 = vcmp.eq.s32.totalorder (!%p216_p2), %v485_v62, %v488_v61 }
   0xc   : > { %v1099_v35 = vpack.c.bf16 (!%p216_p2), %v393_v33, %v392_v32  ;;  %v395_v37 = vld [vmem:[%s1424_s1 + $0x118] sm:$0xff] (!%p216_p2)  ;;  %v396_v40 = vld [vmem:[%s1424_s1 + $0x120] sm:$0xff] (!%p216_p2)  ;;  %v397_v41 = vld [vmem:[%s1424_s1 + $0x128] sm:$0xff] (!%p216_p2)  ;;  %v872_v0 = vsel (!%p216_p2), %vm489_vm1, 1.0, %v1192_v63  ;;  %v873_v1 = vsel (!%p216_p2), %vm490_vm2, 1.0, %v1192_v63  ;;  %vm496_vm3 = vcmp.eq.s32.totalorder (!%p216_p2), %v484_v60, %v874_v2 }
   0xd   : > { %s1431_s22 = smov (!%p249_p3, %s860_s22), 1  ;;  %1074 = vmatpush3.bf16.msra.mxu1 %v1071_v5  ;;  %v1103_v39 = vpack.c.bf16 %v395_v37, %v394_v36  ;;  %v1107_v42 = vpack.c.bf16 %v397_v41, %v396_v40  ;;  %v398_v43 = vld [vmem:[%s1424_s1 + $0x130] sm:$0xff]  ;;  %v399_v44 = vld [vmem:[%s1424_s1 + $0x138] sm:$0xff]  ;;  %v400_v46 = vld [vmem:[%s1424_s1 + $0x140] sm:$0xff]  ;;  %1022 = vmatprep.mubr.msk.f32.mxu0 %vm502_vm0, %v872_v0  ;;  %vm497_vm4 = vcmp.eq.s32.totalorder %v485_v62, %v874_v2  ;;  %v875_v3 = vsel %vm496_vm3, 1.0, %v1192_v63 }
   0xe   : > { %s884_s11 = sshll.u32 %s1431_s22, 4  ;;  %1076 = vmatprep.subr.bf16.mxu1 %v1075_v8  ;;  %v1111_v45 = vpack.c.bf16 %v399_v44, %v398_v43  ;;  %v401_v47 = vld [vmem:[%s1424_s1 + $0x148] sm:$0xff]  ;;  %v402_v49 = vld [vmem:[%s1424_s1 + $0x150] sm:$0xff]  ;;  %v403_v50 = vld [vmem:[%s1424_s1 + $0x158] sm:$0xff]  ;;  %v876_v4 = vsel %vm497_vm4, 1.0, %v1192_v63  ;;  %s869_s26 = sshll.u32 %s1431_s22, 1 }
   0xf   : > { %s253_s16 = scalar_lea.vmem %s1423_s0, %s884_s11  ;;  %v1115_v48 = vpack.c.bf16 %v401_v47, %v400_v46  ;;  %v1119_v51 = vpack.c.bf16 %v403_v50, %v402_v49  ;;  %v404_v52 = vld [vmem:[%s1424_s1 + $0x160] sm:$0xff]  ;;  %v405_v53 = vld [vmem:[%s1424_s1 + $0x168] sm:$0xff]  ;;  %v406_v55 = vld [vmem:[%s1424_s1 + $0x170] sm:$0xff]  ;;  %s258_s25 = scalar_lea.vmem %s1428_s5, %s884_s11 }
  0x10   : > { %v263_v12 = vld [vmem:[%s253_s16] sm:$0xff]  ;;  %v264_v26 = vld [vmem:[%s253_s16 + $0x8] sm:$0xff]  ;;  %v1123_v54 = vpack.c.bf16 %v405_v53, %v404_v52  ;;  %v407_v56 = vld [vmem:[%s1424_s1 + $0x178] sm:$0xff]  ;;  %s262_s29 = scalar_lea.vmem %s1429_s6, %s869_s26 }
  0x11   : > { %v272_v14 = vmul.f32 %v870_v10, %v263_v12  ;;  %1078 = vmatpush3.bf16.msra.mxu1 %v1075_v8  ;;  %v273_v30 = vmul.f32 %v870_v10, %v264_v26  ;;  %v1127_v57 = vpack.c.bf16 %v407_v56, %v406_v55  ;;  %v376_v5 = vld [vmem:[%s1424_s1 + $0x80] sm:$0xff]  ;;  %v377_v6 = vld [vmem:[%s1424_s1 + $0x88] sm:$0xff]  ;;  %v378_v11 = vld [vmem:[%s1424_s1 + $0x90] sm:$0xff] }
  0x12   : > { %1080 = vmatprep.subr.bf16.mxu1 %v1079_v15  ;;  %v1135_v10 = vpack.c.bf16 %v377_v6, %v376_v5  ;;  %v379_v12 = vld [vmem:[%s1424_s1 + $0x98] sm:$0xff]  ;;  %v382_v17 = vld [vmem:[%s1424_s1 + $0xb0] sm:$0xff]  ;;  %v384_v21 = vld [vmem:[%s1424_s1 + $0xc0] sm:$0xff] }
  0x13   : > { %v281_v16 = vadd.f32 %v871_v13, %v272_v14  ;;  %v282_v34 = vadd.f32 %v871_v13, %v273_v30  ;;  %v1139_v13 = vpack.c.bf16 %v379_v12, %v378_v11  ;;  %v380_v14 = vld [vmem:[%s1424_s1 + $0xa0] sm:$0xff]  ;;  %v383_v18 = vld [vmem:[%s1424_s1 + $0xb8] sm:$0xff]  ;;  %v390_v29 = vld [vmem:[%s1424_s1 + $0xf0] sm:$0xff] }
  0x14   : > { %v387_v24 = vld [vmem:[%s1424_s1 + $0xd8] sm:$0xff]  ;;  %v388_v26 = vld [vmem:[%s1424_s1 + $0xe0] sm:$0xff] }
  0x15   : > { %v1280_v19 = vmax.f32 %v281_v16, 0.0  ;;  %1082 = vmatpush3.bf16.msra.mxu1 %v1079_v15  ;;  %v1313_v38 = vmax.f32 %v282_v34, 0.0  ;;  %v381_v15 = vld [vmem:[%s1424_s1 + $0xa8] sm:$0xff]  ;;  %v391_v30 = vld [vmem:[%s1424_s1 + $0xf8] sm:$0xff] }
  0x16   : > { %1084 = vmatprep.subr.bf16.mxu1 %v1083_v20  ;;  %v1143_v16 = vpack.c.bf16 %v381_v15, %v380_v14 }
  0x17   : > { %980 = vmatprep.mubr.f32.mxu1 %v1280_v19 }
  0x19   : > { %1086 = vmatpush3.bf16.msra.mxu1 %v1083_v20  ;;  %v1147_v20 = vpack.c.bf16 %v383_v18, %v382_v17 }
  0x1a   : > { %1088 = vmatprep.subr.bf16.mxu1 %v1087_v23 }
  0x1d   : > { %1090 = vmatpush3.bf16.msra.mxu1 %v1087_v23  ;;  %v386_v23 = vld [vmem:[%s1424_s1 + $0xd0] sm:$0xff] }
  0x1e   : > { %1092 = vmatprep.subr.bf16.mxu1 %v1091_v27  ;;  %v1155_v25 = vpack.c.bf16 %v387_v24, %v386_v23 }
  0x21   : > { %1094 = vmatpush3.bf16.msra.mxu1 %v1091_v27  ;;  %v389_v27 = vld [vmem:[%s1424_s1 + $0xe8] sm:$0xff] }
  0x22   : > { %1096 = vmatprep.subr.bf16.mxu1 %v1095_v31  ;;  %v1159_v28 = vpack.c.bf16 %v389_v27, %v388_v26 }
  0x25   : > { %1098 = vmatpush3.bf16.msra.mxu1 %v1095_v31  ;;  %v1163_v31 = vpack.c.bf16 %v391_v30, %v390_v29 }
  0x26   : > { %1100 = vmatprep.subr.bf16.mxu1 %v1099_v35 }
  0x28   : > { %981 = vmatmul.mubr.f32.vlgmr.msra.gmra.mrb[0].mxu1 %v1313_v38 }
  0x29   : > { %1102 = vmatpush3.bf16.msra.mxu1 %v1099_v35  ;;  %1015 = vmatprep.mubr.f32.mxu1 %v1280_v19  ;;  %v881_v35 = vld [vmem:[%s1425_s2] ss:$0 sm:$0xff] }
  0x2a   : > { %1104 = vmatprep.subr.bf16.mxu1 %v1103_v39 }
  0x2d   : > { %1106 = vmatpush3.bf16.msra.mxu1 %v1103_v39 }
  0x2e   : > { %1108 = vmatprep.subr.bf16.mxu1 %v1107_v42 }
  0x31   : > { %1110 = vmatpush3.bf16.msra.mxu1 %v1107_v42 }
  0x32   : > { %1112 = vmatprep.subr.bf16.mxu1 %v1111_v45 }
  0x35   : > { %1114 = vmatpush3.bf16.msra.mxu1 %v1111_v45 }
  0x36   : > { %1116 = vmatprep.subr.bf16.mxu1 %v1115_v48 }
  0x39   : > { %1118 = vmatpush3.bf16.msra.mxu1 %v1115_v48 }
  0x3a   : > { %1120 = vmatprep.subr.bf16.mxu1 %v1119_v51 }
  0x3d   : > { %1122 = vmatpush3.bf16.msra.mxu1 %v1119_v51 }
  0x3e   : > { %1124 = vmatprep.subr.bf16.mxu1 %v1123_v54 }
  0x41   : > { %1126 = vmatpush3.bf16.msra.mxu1 %v1123_v54 }
  0x42   : > { %1128 = vmatprep.subr.bf16.mxu1 %v1127_v57 }
  0x45   : > { %1130 = vmatpush3.bf16.msra.mxu1 %v1127_v57 }
  0x48   : > { %1016 = vmatmul.mubr.f32.vlgmr.msra.gmra.mrb[2].mxu1 %v1313_v38 }
  0xfb   : > { %v982_v7 = vpop.f32.mrb[0].mxu1 }
  0xfc   : > { %v367_v8 = vpop.f32.mrb[1].mxu1 }
  0xfd   : > { %v1131_v9 = vpack.c.bf16 %v982_v7, %v367_v8 }
  0xff   : > { %1132 = vmatprep.subr.bf16.mxu0 %v1131_v9 }
 0x100   : > { %1134 = vmatpush3.bf16.msra.mxu0 %v1131_v9 }
 0x101   : > { %1136 = vmatprep.subr.bf16.mxu0 %v1135_v10 }
 0x103   : > { %1023 = vmatmul.mubr.msk.f32.vlgmr.msra.gmra.mrb[0].mxu0 %vm502_vm0, %v873_v1 }
 0x104   : > { %1138 = vmatpush3.bf16.msra.mxu0 %v1135_v10  ;;  %1057 = vmatprep.mubr.f32.mxu0 %v1280_v19  ;;  %v385_v19 = vld [vmem:[%s1424_s1 + $0xc8] sm:$0xff] }
 0x105   : > { %1140 = vmatprep.subr.bf16.mxu0 %v1139_v13  ;;  %v1151_v22 = vpack.c.bf16 %v385_v19, %v384_v21 }
 0x108   : > { %1142 = vmatpush3.bf16.msra.mxu0 %v1139_v13 }
 0x109   : > { %1144 = vmatprep.subr.bf16.mxu0 %v1143_v16 }
 0x10c   : > { %1146 = vmatpush3.bf16.msra.mxu0 %v1143_v16 }
 0x10d   : > { %1148 = vmatprep.subr.bf16.mxu0 %v1147_v20 }
 0x110   : > { %1150 = vmatpush3.bf16.msra.mxu0 %v1147_v20 }
 0x111   : > { %1152 = vmatprep.subr.bf16.mxu0 %v1151_v22 }
 0x114   : > { %1154 = vmatpush3.bf16.msra.mxu0 %v1151_v22 }
 0x115   : > { %1156 = vmatprep.subr.bf16.mxu0 %v1155_v25 }
 0x118   : > { %1158 = vmatpush3.bf16.msra.mxu0 %v1155_v25 }
 0x119   : > { %1160 = vmatprep.subr.bf16.mxu0 %v1159_v28 }
 0x11b   : > { %v1017_v32 = vpop.f32.mrb[2].mxu1 }
 0x11c   : > { %1162 = vmatpush3.bf16.msra.mxu0 %v1159_v28  ;;  %v474_v33 = vpop.f32.mrb[3].mxu1 }
 0x11d   : > { %v1167_v34 = vpack.c.bf16 %v1017_v32, %v474_v33  ;;  %1164 = vmatprep.subr.bf16.mxu0 %v1163_v31 }
 0x120   : > { %1166 = vmatpush3.bf16.msra.mxu0 %v1163_v31 }
 0x121   : > { %1168 = vmatprep.subr.bf16.mxu0 %v1167_v34 }
 0x123   : > { %1058 = vmatmul.mubr.f32.vlgmr.msra.gmra.mrb[0].mxu0 %v1313_v38 }
 0x124   : > { %1170 = vmatpush3.bf16.msra.mxu0 %v1167_v34  ;;  %1064 = vmatprep.mubr.msk.f32.mxu0 %vm502_vm0, %v875_v3 }
 0x12b   : > { %1065 = vmatmul.mubr.msk.f32.vlgmr.msra.gmra.mrb[0].mxu0 %vm502_vm0, %v876_v4 }
 0x1fe   : > { %v1066_v36 = vpop.f32.mrb[0].mxu0 }
 0x1ff   : > { %v750_v37 = vadd.f32 %v1066_v36, %v881_v35  ;;  %v731_v39 = vpop.f32.mrb[1].mxu0 }
 0x200   : > { %v749_v40 = vadd.f32 %v881_v35, %v731_v39 }
 0x201   : > { %773 = vst [vmem:[%s258_s25 + $0x8] sm:$0xff] %v750_v37 }
 0x202   : > { %v751_v38 = vadd.f32 %v750_v37, %v749_v40  ;;  %772 = vst [vmem:[%s258_s25] sm:$0xff] %v749_v40 }
 0x204   : > { %v752_v41 = vrot.slane %v751_v38, 4 }
 0x206   : > { %v753_v42 = vadd.f32 %v752_v41, %v751_v38 }
 0x208   : > { %v754_v43 = vrot.slane %v753_v42, 2 }
 0x20a   : > { %v755_v44 = vadd.f32 %v754_v43, %v753_v42 }
 0x20c   : > { %v756_v45 = vrot.slane %v755_v44, 1 }
 0x20e   : > { %v757_v46 = vadd.f32 %v756_v45, %v755_v44 }
 0x210   : > { %v758_v47 = vmul.f32 0.0625, %v757_v46  ;;  %761 = vst [vmem:[%s262_s29] sm:$0x1] %v757_v46 }
 0x212   : > { %v759_v48 = vsub.f32 %v749_v40, %v758_v47  ;;  %v760_v49 = vsub.f32 %v750_v37, %v758_v47 }
 0x214   : > { %v762_v50 = vmul.f32 %v759_v48, %v759_v48  ;;  %v763_v51 = vmul.f32 %v760_v49, %v760_v49 }
 0x216   : > { %v764_v52 = vadd.f32 %v763_v51, %v762_v50 }
 0x218   : > { %v765_v53 = vrot.slane %v764_v52, 4 }
 0x21a   : > { %v766_v54 = vadd.f32 %v765_v53, %v764_v52 }
 0x21c   : > { %v767_v55 = vrot.slane %v766_v54, 2 }
 0x21e   : > { %v768_v56 = vadd.f32 %v767_v55, %v766_v54 }
 0x220   : > { %v769_v57 = vrot.slane %v768_v56, 1 }
 0x222   : > { %v770_v58 = vadd.f32 %v769_v57, %v768_v56 }
 0x224   : > { %771 = vst [vmem:[%s262_s29 + $0x1] sm:$0x1] %v770_v58 }
 0x225 PF: > { %s17_s21 = sadd.s32 1, %s1190_s21  }
 0x226   : > { %p14_p4 = scmp.ge.s32.totalorder %s17_s21, 4  }
 0x228   :  { %16 = sbr.rel (!%p14_p4) target bundleno = 1 (0x1), region = 82 }

// kernel: conv_block_forward.5
= control target key start
LH: loop header
LB: loop body
LE: loop exit
PB: predicated region body
PF: predicated region fallthrough
CT: control target
= control target key end

     0   :  { %s301_s12 = smov 0   ;;  %s318_s0 = inlined_call_operand.vmem [shape: f32[2,16,128], index: 0, kind: input, shape index: {}]   ;;  %s319_s1 = inlined_call_operand.vmem [shape: f32[1,128], index: 1, kind: input, shape index: {}]   ;;  %s320_s2 = inlined_call_operand.vmem [shape: f32[1,128], index: 2, kind: input, shape index: {}]   ;;  %s321_s3 = inlined_call_operand.vmem [shape: f32[2,16,128], index: 3, kind: output, shape index: {}]  }
   0x1 LB: > { %s250_s13 = sadd.s32 4294967295, %s279_s12   ;;  %p254_p0 = scmp.ge.s32.totalorder %s279_s12, 1  ;;  %s279_s12 = sphi %s301_s12, %s13_s12  }
   0x2   : > { %p137_p1 = scmp.lt.s32.totalorder %s279_s12, 3 }
   0x4   : > { %p138_p2 = pnand %p254_p0, %p137_p1 }
   0x5   : > { %p161_p3 = scmp.lt.s32.totalorder (!%p138_p2), %s250_s13, 1  ;;  %v259_v0 = vld [vmem:[%s319_s1] ss:$0 sm:$0xff] (!%p138_p2) }
   0x6   : > { %141 = sbr.rel (%p138_p2) target bundleno = 24 (0x18), region = 32  ;;  %v260_v3 = vld [vmem:[%s320_s2] ss:$0 sm:$0xff] (!%p138_p2) }
   0xd   : > { %s323_s13 = smov (!%p161_p3, %s250_s13), 1 }
   0xe   : > { %s263_s14 = sshll.u32 %s323_s13, 4 }
   0xf   : > { %s165_s19 = scalar_lea.vmem %s318_s0, %s263_s14  ;;  %s170_s24 = scalar_lea.vmem %s321_s3, %s263_s14 }
  0x10   : > { %v171_v1 = vld [vmem:[%s165_s19] sm:$0xff]  ;;  %v172_v2 = vld [vmem:[%s165_s19 + $0x8] sm:$0xff] }
  0x11   : > { %v180_v4 = vmul.f32 %v259_v0, %v171_v1  ;;  %v181_v5 = vmul.f32 %v259_v0, %v172_v2 }
  0x13   : > { %v189_v6 = vadd.f32 %v260_v3, %v180_v4  ;;  %v190_v7 = vadd.f32 %v260_v3, %v181_v5 }
  0x15   : > { %v191_v8 = vmax.f32 %v189_v6, 0.0  ;;  %v192_v9 = vmax.f32 %v190_v7, 0.0 }
  0x17   : > { %193 = vst [vmem:[%s170_s24] sm:$0xff] %v191_v8  ;;  %194 = vst [vmem:[%s170_s24 + $0x8] sm:$0xff] %v192_v9 }
  0x18 PF: > { %s13_s12 = sadd.s32 1, %s279_s12  }
  0x19   : > { %p10_p4 = scmp.ge.s32.totalorder %s13_s12, 4  }
  0x1b   :  { %12 = sbr.rel (!%p10_p4) target bundleno = 1 (0x1), region = 62 }

</bundles_post_ra>
